<compile_context>
chip_gen: v7x
topology: tpu7x:2x2x1
jax: 0.10.0
libtpu: 0.0.40
codegen_flags: <defaults>
</compile_context>

<pallas_src>
import jax
import jax.numpy as jnp
from jax.experimental import pallas as pl
from jax.experimental.pallas import tpu as pltpu


def _cdiv(a, b):
    return -(-a // b)


def _round_up(n, m):
    return _cdiv(n, m) * m


def _make_dqn_kernel(pack_rows):
    """Kernel factory: pack_rows>1 emits a lane-dense packed output store."""

    def kernel(x_ref, w1_ref, b1_ref, w2_ref, b2_ref, o_ref):
        # fc1: (TB, in) f32 -> bf16 (in-kernel cast, VPU has slack) @ (in, 128)
        # bf16, f32 accumulation on the MXU.
        xb = x_ref[...].astype(jnp.bfloat16)
        h = jnp.dot(xb, w1_ref[...], preferred_element_type=jnp.float32)
        h = jnp.maximum(h + b1_ref[...], 0.0)              # bias + ReLU in f32
        # fc2: (TB, 128) bf16 @ (128, out) bf16, f32 accumulation.
        y = jnp.dot(h.astype(jnp.bfloat16), w2_ref[...],
                    preferred_element_type=jnp.float32)
        y = y + b2_ref[...]                                 # (TB, out) + (1, out)
        if pack_rows > 1:
            tb, oa = y.shape
            # Pack 128//out_actions batch rows per 128-lane output row so the
            # store is unmasked and the HBM writeback is contiguous.
            y = y.reshape(tb // pack_rows, pack_rows * oa)
        o_ref[...] = y

    return kernel


def _dqn_forward_impl(x, w1, b1, w2, b2, *, tb, pack_output):
    B, in_states = x.shape
    hidden, out_actions = w2.shape
    assert w1.shape == (in_states, hidden)

    pack = bool(pack_output) and (out_actions < 128) and (128 % out_actions == 0)
    pack_rows = (128 // out_actions) if pack else 1
    # Multi-step blocks need x-rows % 8 == 0 and packed-out rows % 8 == 0.
    step_align = 8 * pack_rows

    # Tile selection: big tiles amortize the ~0.35us per-step overhead; cap at
    # ~half the batch so the "parallel" axis has >=2 steps for v7x's two TCs.
    if B > step_align:
        TB = min(_round_up(tb, step_align), _round_up(_cdiv(B, 2), step_align))
    else:
        TB = _round_up(B, max(8, pack_rows))        # tiny batch: single tile
    n_steps = _cdiv(B, TB)
    B_pad = n_steps * TB

    # Weights are ~5 KB; casting them wrapper-side is free. x stays f32.
    w1_bf = w1.astype(jnp.bfloat16)
    w2_bf = w2.astype(jnp.bfloat16)

    # Same block every grid step -> stays VMEM-resident (no re-DMA).
    def resident(a):
        return pl.BlockSpec(a.shape, lambda i: (0,) * a.ndim)

    if pack:
        out_shape = jax.ShapeDtypeStruct((B_pad // pack_rows, 128), jnp.float32)
        out_spec = pl.BlockSpec((TB // pack_rows, 128), lambda i: (i, 0))
    else:
        out_shape = jax.ShapeDtypeStruct((B_pad, out_actions), jnp.float32)
        out_spec = pl.BlockSpec((TB, out_actions), lambda i: (i, 0))

    y = pl.pallas_call(
        _make_dqn_kernel(pack_rows),
        out_shape=out_shape,
        grid=(n_steps,),
        in_specs=[
            pl.BlockSpec((TB, in_states), lambda i: (i, 0)),   # x tile (f32)
            resident(w1_bf),
            resident(b1),
            resident(w2_bf),
            resident(b2),
        ],
        out_specs=out_spec,
        compiler_params=pltpu.CompilerParams(
            dimension_semantics=("parallel",),       # v7x: shard tiles on 2 TCs
            vmem_limit_bytes=48 * 1024 * 1024,       # headroom for tb>=8192 (v5e)
        ),
    )(x, w1_bf, b1, w2_bf, b2)

    if pack:
        # Row-major relabel only (no data movement), then slice off pad rows.
        y = y.reshape(B_pad, out_actions)
    return y[:B, :]


def dqn_forward(x, w1, b1, w2, b2, *, tb=4096, pack_output=None):
    """Fused DQN forward. x: (B, in_states) f32 -> (B, out_actions) f32.

    Precision: bf16 matmul inputs with f32 accumulation (the PyTorch module is
    float64; TPUs have no f64 MXU path).
    """
    if pack_output is None:
        try:
            return _dqn_forward_impl(x, w1, b1, w2, b2, tb=tb, pack_output=True)
        except Exception:
            # TODO(synk): if the in-kernel (TB,A)->(TB//pack,128) relayout is not
            # supported by this Mosaic build, fall back to the masked-store path.
            return _dqn_forward_impl(x, w1, b1, w2, b2, tb=tb, pack_output=False)
    return _dqn_forward_impl(x, w1, b1, w2, b2, tb=tb, pack_output=pack_output)


def init_params(key, in_states, hidden, out_actions):
    """Deterministic init mimicking nn.Linear's U(-1/sqrt(fan_in), 1/sqrt(fan_in))."""
    k1, k2, k3, k4 = jax.random.split(key, 4)
    bound1 = 1.0 / jnp.sqrt(jnp.float32(in_states))
    bound2 = 1.0 / jnp.sqrt(jnp.float32(hidden))
    w1 = jax.random.uniform(k1, (in_states, hidden), jnp.float32, -bound1, bound1)
    b1 = jax.random.uniform(k2, (1, hidden), jnp.float32, -bound1, bound1)
    w2 = jax.random.uniform(k3, (hidden, out_actions), jnp.float32, -bound2, bound2)
    b2 = jax.random.uniform(k4, (1, out_actions), jnp.float32, -bound2, bound2)
    return w1, b1, w2, b2


if __name__ == "__main__":
    key = jax.random.PRNGKey(0)
    in_states, hidden, out_actions = 16, 128, 4

    kx, kp, kx2 = jax.random.split(key, 3)
    w1, b1, w2, b2 = init_params(kp, in_states, hidden, out_actions)

    def ref_forward(x):
        # Pure-JAX reference with the same bf16-input / f32-accumulate path.
        xb = x.astype(jnp.bfloat16).astype(jnp.float32)
        w1b = w1.astype(jnp.bfloat16).astype(jnp.float32)
        w2b = w2.astype(jnp.bfloat16).astype(jnp.float32)
        h = jnp.maximum(xb @ w1b + b1, 0.0)
        hb = h.astype(jnp.bfloat16).astype(jnp.float32)
        return hb @ w2b + b2

    # Small single-tile batch.
    x = jax.random.normal(kx, (8, in_states), jnp.float32)
    y = dqn_forward(x, w1, b1, w2, b2)
    jax.block_until_ready(y)
    assert y.shape == (8, out_actions)
    assert jnp.allclose(y, ref_forward(x), atol=1e-2, rtol=1e-2)

    # Batch not divisible by the tile: multi-step grid + partial last block,
    # exercising the no-pad boundary handling and (on v7x) both TensorCores.
    x2 = jax.random.normal(kx2, (300, in_states), jnp.float32)
    y2 = dqn_forward(x2, w1, b1, w2, b2)
    jax.block_until_ready(y2)
    assert y2.shape == (300, out_actions)
    assert jnp.allclose(y2, ref_forward(x2), atol=1e-2, rtol=1e-2)

    # Explicit skinny-output path (also covers the packed-store fallback kernel).
    y3 = dqn_forward(x2, w1, b1, w2, b2, pack_output=False)
    jax.block_until_ready(y3)
    assert y3.shape == (300, out_actions)
    assert jnp.allclose(y3, ref_forward(x2), atol=1e-2, rtol=1e-2)

    print("KERNEL_OK")
</pallas_src>

<mosaic_0001>
module attributes {stable_mosaic.version = 11 : i64} {
  func.func @kernel(%arg0: i32, %arg1: memref<32x16xf32, #tpu.memory_space<vmem>>, %arg2: memref<16x128xbf16, #tpu.memory_space<vmem>>, %arg3: memref<1x128xf32, #tpu.memory_space<vmem>>, %arg4: memref<128x4xbf16, #tpu.memory_space<vmem>>, %arg5: memref<1x4xf32, #tpu.memory_space<vmem>>, %arg6: memref<1x128xf32, #tpu.memory_space<vmem>>) attributes {dimension_semantics = [#tpu.dimension_semantics<parallel>], iteration_bounds = array<i64: 1>, scalar_prefetch = 0 : i64, scratch_operands = 0 : i64, tpu.core_type = #tpu.core_type<tc>, window_params = [{transform_indices = @transform_0, window_bounds = array<i64: 32, 16>}, {pipeline_mode = #tpu.pipeline_mode<synchronous>, transform_indices = @transform_1, window_bounds = array<i64: 16, 128>}, {pipeline_mode = #tpu.pipeline_mode<synchronous>, transform_indices = @transform_2, window_bounds = array<i64: 1, 128>}, {pipeline_mode = #tpu.pipeline_mode<synchronous>, transform_indices = @transform_3, window_bounds = array<i64: 128, 4>}, {pipeline_mode = #tpu.pipeline_mode<synchronous>, transform_indices = @transform_4, window_bounds = array<i64: 1, 4>}, {transform_indices = @transform_5, window_bounds = array<i64: 1, 128>}]} {
    %c0 = arith.constant 0 : index
    %c0_0 = arith.constant 0 : index
    %0 = vector.load %arg1[%c0, %c0_0] : memref<32x16xf32, #tpu.memory_space<vmem>>, vector<32x16xf32>
    %1 = arith.truncf %0 : vector<32x16xf32> to vector<32x16xbf16>
    %c0_1 = arith.constant 0 : index
    %c0_2 = arith.constant 0 : index
    %2 = vector.load %arg2[%c0_1, %c0_2] : memref<16x128xbf16, #tpu.memory_space<vmem>>, vector<16x128xbf16>
    %cst = arith.constant dense<0.000000e+00> : vector<32x128xf32>
    %3 = tpu.matmul %1, %2, %cst {dimension_numbers = #tpu.dot_dimension_numbers<[1], [0], [0], [1], [0, 0, 1, 1], [], []>} : vector<32x16xbf16>, vector<16x128xbf16>, vector<32x128xf32> -> vector<32x128xf32>
    %c0_3 = arith.constant 0 : index
    %c0_4 = arith.constant 0 : index
    %4 = vector.load %arg3[%c0_3, %c0_4] : memref<1x128xf32, #tpu.memory_space<vmem>>, vector<1x128xf32>
    %5 = vector.broadcast %4 : vector<1x128xf32> to vector<32x128xf32>
    %6 = arith.addf %3, %5 : vector<32x128xf32>
    %cst_5 = arith.constant 0.000000e+00 : f32
    %7 = vector.broadcast %cst_5 : f32 to vector<32x128xf32>
    %8 = arith.maximumf %6, %7 : vector<32x128xf32>
    %9 = arith.truncf %8 : vector<32x128xf32> to vector<32x128xbf16>
    %c0_6 = arith.constant 0 : index
    %c0_7 = arith.constant 0 : index
    %10 = vector.load %arg4[%c0_6, %c0_7] : memref<128x4xbf16, #tpu.memory_space<vmem>>, vector<128x4xbf16>
    %cst_8 = arith.constant dense<0.000000e+00> : vector<32x4xf32>
    %11 = tpu.matmul %9, %10, %cst_8 {dimension_numbers = #tpu.dot_dimension_numbers<[1], [0], [0], [1], [0, 0, 1, 1], [], []>} : vector<32x128xbf16>, vector<128x4xbf16>, vector<32x4xf32> -> vector<32x4xf32>
    %c0_9 = arith.constant 0 : index
    %c0_10 = arith.constant 0 : index
    %12 = vector.load %arg5[%c0_9, %c0_10] : memref<1x4xf32, #tpu.memory_space<vmem>>, vector<1x4xf32>
    %13 = vector.broadcast %12 : vector<1x4xf32> to vector<32x4xf32>
    %14 = arith.addf %11, %13 : vector<32x4xf32>
    %15 = vector.shape_cast %14 : vector<32x4xf32> to vector<1x128xf32>
    %c0_11 = arith.constant 0 : index
    %c0_12 = arith.constant 0 : index
    %16 = vector.load %arg6[%c0_11, %c0_12] : memref<1x128xf32, #tpu.memory_space<vmem>>, vector<1x128xf32>
    tpu.vector_store %arg6[%c0_11, %c0_12], %15 {strides = array<i32>} : memref<1x128xf32, #tpu.memory_space<vmem>>, vector<1x128xf32>,
    return
  }
  func.func @transform_0(%arg0: i32) -> (i32, i32) {
    %c0_i32 = arith.constant 0 : i32
    %c0_i32_0 = arith.constant 0 : i32
    return %arg0, %c0_i32 : i32, i32
  }
  func.func @transform_1(%arg0: i32) -> (i32, i32) {
    %c0_i32 = arith.constant 0 : i32
    %c0_i32_0 = arith.constant 0 : i32
    %c0_i32_1 = arith.constant 0 : i32
    return %c0_i32, %c0_i32_0 : i32, i32
  }
  func.func @transform_2(%arg0: i32) -> (i32, i32) {
    %c0_i32 = arith.constant 0 : i32
    %c0_i32_0 = arith.constant 0 : i32
    %c0_i32_1 = arith.constant 0 : i32
    return %c0_i32, %c0_i32_0 : i32, i32
  }
  func.func @transform_3(%arg0: i32) -> (i32, i32) {
    %c0_i32 = arith.constant 0 : i32
    %c0_i32_0 = arith.constant 0 : i32
    %c0_i32_1 = arith.constant 0 : i32
    return %c0_i32, %c0_i32_0 : i32, i32
  }
  func.func @transform_4(%arg0: i32) -> (i32, i32) {
    %c0_i32 = arith.constant 0 : i32
    %c0_i32_0 = arith.constant 0 : i32
    %c0_i32_1 = arith.constant 0 : i32
    return %c0_i32, %c0_i32_0 : i32, i32
  }
  func.func @transform_5(%arg0: i32) -> (i32, i32) {
    %c0_i32 = arith.constant 0 : i32
    %c0_i32_0 = arith.constant 0 : i32
    return %arg0, %c0_i32 : i32, i32
  }
}

module attributes {stable_mosaic.version = 11 : i64} {
  func.func @kernel(%arg0: i32, %arg1: memref<8x16xf32, #tpu.memory_space<vmem>>, %arg2: memref<16x128xbf16, #tpu.memory_space<vmem>>, %arg3: memref<1x128xf32, #tpu.memory_space<vmem>>, %arg4: memref<128x4xbf16, #tpu.memory_space<vmem>>, %arg5: memref<1x4xf32, #tpu.memory_space<vmem>>, %arg6: memref<8x4xf32, #tpu.memory_space<vmem>>) attributes {dimension_semantics = [#tpu.dimension_semantics<parallel>], iteration_bounds = array<i64: 1>, scalar_prefetch = 0 : i64, scratch_operands = 0 : i64, tpu.core_type = #tpu.core_type<tc>, window_params = [{transform_indices = @transform_0, window_bounds = array<i64: 8, 16>}, {pipeline_mode = #tpu.pipeline_mode<synchronous>, transform_indices = @transform_1, window_bounds = array<i64: 16, 128>}, {pipeline_mode = #tpu.pipeline_mode<synchronous>, transform_indices = @transform_2, window_bounds = array<i64: 1, 128>}, {pipeline_mode = #tpu.pipeline_mode<synchronous>, transform_indices = @transform_3, window_bounds = array<i64: 128, 4>}, {pipeline_mode = #tpu.pipeline_mode<synchronous>, transform_indices = @transform_4, window_bounds = array<i64: 1, 4>}, {transform_indices = @transform_5, window_bounds = array<i64: 8, 4>}]} {
    %c0 = arith.constant 0 : index
    %c0_0 = arith.constant 0 : index
    %0 = vector.load %arg1[%c0, %c0_0] : memref<8x16xf32, #tpu.memory_space<vmem>>, vector<8x16xf32>
    %1 = arith.truncf %0 : vector<8x16xf32> to vector<8x16xbf16>
    %c0_1 = arith.constant 0 : index
    %c0_2 = arith.constant 0 : index
    %2 = vector.load %arg2[%c0_1, %c0_2] : memref<16x128xbf16, #tpu.memory_space<vmem>>, vector<16x128xbf16>
    %cst = arith.constant dense<0.000000e+00> : vector<8x128xf32>
    %3 = tpu.matmul %1, %2, %cst {dimension_numbers = #tpu.dot_dimension_numbers<[1], [0], [0], [1], [0, 0, 1, 1], [], []>} : vector<8x16xbf16>, vector<16x128xbf16>, vector<8x128xf32> -> vector<8x128xf32>
    %c0_3 = arith.constant 0 : index
    %c0_4 = arith.constant 0 : index
    %4 = vector.load %arg3[%c0_3, %c0_4] : memref<1x128xf32, #tpu.memory_space<vmem>>, vector<1x128xf32>
    %5 = vector.broadcast %4 : vector<1x128xf32> to vector<8x128xf32>
    %6 = arith.addf %3, %5 : vector<8x128xf32>
    %cst_5 = arith.constant 0.000000e+00 : f32
    %7 = vector.broadcast %cst_5 : f32 to vector<8x128xf32>
    %8 = arith.maximumf %6, %7 : vector<8x128xf32>
    %9 = arith.truncf %8 : vector<8x128xf32> to vector<8x128xbf16>
    %c0_6 = arith.constant 0 : index
    %c0_7 = arith.constant 0 : index
    %10 = vector.load %arg4[%c0_6, %c0_7] : memref<128x4xbf16, #tpu.memory_space<vmem>>, vector<128x4xbf16>
    %cst_8 = arith.constant dense<0.000000e+00> : vector<8x4xf32>
    %11 = tpu.matmul %9, %10, %cst_8 {dimension_numbers = #tpu.dot_dimension_numbers<[1], [0], [0], [1], [0, 0, 1, 1], [], []>} : vector<8x128xbf16>, vector<128x4xbf16>, vector<8x4xf32> -> vector<8x4xf32>
    %c0_9 = arith.constant 0 : index
    %c0_10 = arith.constant 0 : index
    %12 = vector.load %arg5[%c0_9, %c0_10] : memref<1x4xf32, #tpu.memory_space<vmem>>, vector<1x4xf32>
    %13 = vector.broadcast %12 : vector<1x4xf32> to vector<8x4xf32>
    %14 = arith.addf %11, %13 : vector<8x4xf32>
    %c0_11 = arith.constant 0 : index
    %c0_12 = arith.constant 0 : index
    %15 = vector.load %arg6[%c0_11, %c0_12] : memref<8x4xf32, #tpu.memory_space<vmem>>, vector<8x4xf32>
    tpu.vector_store %arg6[%c0_11, %c0_12], %14 {strides = array<i32>} : memref<8x4xf32, #tpu.memory_space<vmem>>, vector<8x4xf32>,
    return
  }
  func.func @transform_0(%arg0: i32) -> (i32, i32) {
    %c0_i32 = arith.constant 0 : i32
    %c0_i32_0 = arith.constant 0 : i32
    return %arg0, %c0_i32 : i32, i32
  }
  func.func @transform_1(%arg0: i32) -> (i32, i32) {
    %c0_i32 = arith.constant 0 : i32
    %c0_i32_0 = arith.constant 0 : i32
    %c0_i32_1 = arith.constant 0 : i32
    return %c0_i32, %c0_i32_0 : i32, i32
  }
  func.func @transform_2(%arg0: i32) -> (i32, i32) {
    %c0_i32 = arith.constant 0 : i32
    %c0_i32_0 = arith.constant 0 : i32
    %c0_i32_1 = arith.constant 0 : i32
    return %c0_i32, %c0_i32_0 : i32, i32
  }
  func.func @transform_3(%arg0: i32) -> (i32, i32) {
    %c0_i32 = arith.constant 0 : i32
    %c0_i32_0 = arith.constant 0 : i32
    %c0_i32_1 = arith.constant 0 : i32
    return %c0_i32, %c0_i32_0 : i32, i32
  }
  func.func @transform_4(%arg0: i32) -> (i32, i32) {
    %c0_i32 = arith.constant 0 : i32
    %c0_i32_0 = arith.constant 0 : i32
    %c0_i32_1 = arith.constant 0 : i32
    return %c0_i32, %c0_i32_0 : i32, i32
  }
  func.func @transform_5(%arg0: i32) -> (i32, i32) {
    %c0_i32 = arith.constant 0 : i32
    %c0_i32_0 = arith.constant 0 : i32
    return %arg0, %c0_i32 : i32, i32
  }
}

</mosaic_0001>

<bundles_post_ra>
// kernel: tpu_custom_call.1
= control target key start
LH: loop header
LB: loop body
LE: loop exit
PB: predicated region body
PF: predicated region fallthrough
CT: control target
= control target key end

     0   :  { %v261_v0 = vmov 0.0   ;;  %vm262_vm0 = vmmov 0   ;;  %vm38_vm1 = vcmask 130048   ;;  %vm195_vm2 = vcmask 31744   ;;  %s332_s1 = inlined_call_operand.vmem [shape: bf16[16,128], index: 1, kind: input, shape index: {}]   ;;  %s333_s0 = inlined_call_operand.vmem [shape: f32[8,16], index: 0, kind: input, shape index: {}]   ;;  %s334_s3 = inlined_call_operand.vmem [shape: bf16[128,4], index: 3, kind: input, shape index: {}]   ;;  %s335_s2 = inlined_call_operand.vmem [shape: f32[1,128], index: 2, kind: input, shape index: {}]   ;;  %s336_s4 = inlined_call_operand.vmem [shape: f32[1,4], index: 4, kind: input, shape index: {}]   ;;  %s337_s5 = inlined_call_operand.vmem [shape: f32[8,4], index: 5, kind: output, shape index: {}]  }
   0x1   :  { %224 = vmatprep.subr.bf16.mxu0 %v261_v0  ;;  %v252_v1 = vld [vmem:[%s332_s1] sm:$0xff]   ;;  %226 = vmatprep.mubr.msk.bf16.mxu0 %vm262_vm0, %v261_v0  ;;  %v254_v5 = vld [vmem:[%s334_s3 + $0x8] sm:$0xff]   ;;  %v255_v6 = vld [vmem:[%s334_s3 + $0x10] sm:$0xff]  }
   0x2   :  { %v21_v2 = vld [vmem:[%s333_s0] sm:$0xff]  ;;  %230 = vmatprep.subr.bf16.mxu1 %v261_v0  ;;  %246 = vmatprep.mubr.msk.bf16.mxu1 %vm262_vm0, %v261_v0  ;;  %v256_v7 = vld [vmem:[%s334_s3 + $0x18] sm:$0xff]   ;;  %v258_v9 = vld [vmem:[%s334_s3 + $0x28] sm:$0xff]  }
   0x3   :  { %225 = vmatpush3.bf16.msra.mxu0 %v252_v1  ;;  %v22_v3 = vpack.c.bf16 %v21_v2, %v21_v2  ;;  %v253_v4 = vld [vmem:[%s334_s3] sm:$0xff]   ;;  %v259_v10 = vld [vmem:[%s334_s3 + $0x30] sm:$0xff]   ;;  %v260_v11 = vld [vmem:[%s334_s3 + $0x38] sm:$0xff]  }
   0x4   :  { %231 = vmatpush3.bf16.msra.mxu1 %v253_v4  ;;  %v257_v8 = vld [vmem:[%s334_s3 + $0x20] sm:$0xff]  }
   0x5   :  { %232 = vmatprep.subr.bf16.mxu1 %v261_v0  ;;  %v201_v12 = vld [vmem:[%s335_s2] ss:$0 sm:$0xff] }
   0x6   :  { %227 = vmatmul.mubr.msk.bf16.vlgmr.msra.gmra.mrb[0].mxu0 %vm38_vm1, %v22_v3  ;;  %v204_v20 = vld [vmem:[%s336_s4] ss:$0 sm:$0xff] }
   0x8   :  { %233 = vmatpush3.bf16.msra.mxu1 %v254_v5 }
   0x9   :  { %234 = vmatprep.subr.bf16.mxu1 %v261_v0 }
   0xc   :  { %235 = vmatpush3.bf16.msra.mxu1 %v255_v6 }
   0xd   :  { %236 = vmatprep.subr.bf16.mxu1 %v261_v0 }
  0x10   :  { %237 = vmatpush3.bf16.msra.mxu1 %v256_v7 }
  0x11   :  { %238 = vmatprep.subr.bf16.mxu1 %v261_v0 }
  0x14   :  { %239 = vmatpush3.bf16.msra.mxu1 %v257_v8 }
  0x15   :  { %240 = vmatprep.subr.bf16.mxu1 %v261_v0 }
  0x18   :  { %241 = vmatpush3.bf16.msra.mxu1 %v258_v9 }
  0x19   :  { %242 = vmatprep.subr.bf16.mxu1 %v261_v0 }
  0x1c   :  { %243 = vmatpush3.bf16.msra.mxu1 %v259_v10 }
  0x1d   :  { %244 = vmatprep.subr.bf16.mxu1 %v261_v0 }
  0x20   :  { %245 = vmatpush3.bf16.msra.mxu1 %v260_v11 }
  0xd9   :  { %v76_v13 = vpop.f32.mrb[0].mxu0 }
  0xda   :  { %v77_v14 = vadd.f32 %v201_v12, %v76_v13  ;;  %v228_v15 = vpop.f32.mrb[1].mxu0 }
  0xdb   :  { %v79_v16 = vpop.f32.mrb[2].mxu0 }
  0xdc   :  { %v82_v17 = vmax.f32 %v77_v14, 0.0  ;;  %v229_v18 = vpop.f32.mrb[3].mxu0 }
  0xde   :  { %v83_v19 = vpack.c.bf16 %v82_v17, %v82_v17 }
  0xe0   :  { %247 = vmatmul.mubr.bf16.vlgmr.msra.gmra.mrb[0].mxu1 %v83_v19 }
 0x1b3   :  { %v189_v21 = vpop.f32.mrb[0].mxu1 }
 0x1b4   :  { %v190_v22 = vadd.f32 %v204_v20, %v189_v21  ;;  %v248_v23 = vpop.f32.mrb[1].mxu1 }
 0x1b5   :  { %v192_v24 = vpop.f32.mrb[2].mxu1 }
 0x1b6   :  { %196 = vst.msk [vmem:[%s337_s5] sm:$0xff] %vm195_vm2, %v190_v22  ;;  %v249_v25 = vpop.f32.mrb[3].mxu1 }

</bundles_post_ra>
